<compile_context>
chip_gen: v5e
topology: v5e:2x2
jax: 0.10.0
libtpu: 0.0.40
codegen_flags: <defaults>
</compile_context>

<pallas_src>
import functools

import jax
import jax.numpy as jnp
from jax.experimental import pallas as pl
from jax.experimental.pallas import tpu as pltpu


def make_position_table(num_hiddens: int, max_len: int = 1000) -> jnp.ndarray:
    """Builds the (max_len, num_hiddens) sinusoidal table (matches PyTorch init)."""
    pos = jnp.arange(max_len, dtype=jnp.float32).reshape(-1, 1)
    div = jnp.power(
        10000.0,
        jnp.arange(0, num_hiddens, 2, dtype=jnp.float32) / num_hiddens,
    )
    X = pos / div  # (max_len, ceil(H/2))
    P = jnp.zeros((max_len, num_hiddens), dtype=jnp.float32)
    P = P.at[:, 0::2].set(jnp.sin(X))
    P = P.at[:, 1::2].set(jnp.cos(X[:, : num_hiddens // 2]))
    return P


def _mix32(h):
    """Murmur3-style 32-bit finalizer (stateless hash, VPU-only integer ops)."""
    h = h ^ (h >> jnp.uint32(16))
    h = h * jnp.uint32(0x7FEB352D)
    h = h ^ (h >> jnp.uint32(15))
    h = h * jnp.uint32(0x846CA68B)
    h = h ^ (h >> jnp.uint32(16))
    return h


def _pe_add_kernel(x_ref, p_ref, o_ref):
    # x_ref: (B, TCOL), p_ref: (1, TCOL) -> sublane broadcast of the table.
    o_ref[...] = (x_ref[...] + p_ref[...]).astype(o_ref.dtype)


def _pe_dropout_kernel(seed_ref, x_ref, p_ref, o_ref, *,
                       dropout_p: float, col_tile: int, total_cols: int):
    y = x_ref[...] + p_ref[...]  # (B, TCOL) + (1, TCOL) broadcast

    blk_rows, blk_cols = x_ref.shape
    rows = jax.lax.broadcasted_iota(jnp.uint32, (blk_rows, blk_cols), 0)
    cols = jax.lax.broadcasted_iota(jnp.uint32, (blk_rows, blk_cols), 1)
    col0 = pl.program_id(0).astype(jnp.uint32) * jnp.uint32(col_tile)
    flat = rows * jnp.uint32(total_cols) + (col0 + cols)  # global element id

    seed = seed_ref[0].astype(jnp.uint32)
    h = _mix32(flat ^ (seed * jnp.uint32(0x9E3779B9) + jnp.uint32(0x85EBCA6B)))

    # Integer-threshold compare: P(drop) = thresh / 2^32 ~= dropout_p.
    thresh = jnp.uint32(min(int(round(dropout_p * 4294967296.0)), 4294967295))
    keep = h >= thresh
    scale = jnp.float32(1.0 / (1.0 - dropout_p))
    y = y * jnp.where(keep, scale, jnp.float32(0.0)).astype(y.dtype)

    o_ref[...] = y.astype(o_ref.dtype)


def _choose_col_tile(total_cols: int, rows: int, itemsize: int,
                     target_bytes: int = 1 << 21) -> int:
    """Largest 128-multiple divisor of total_cols whose x-tile fits the budget."""
    cands = [c for c in range(128, total_cols + 1, 128) if total_cols % c == 0]
    if not cands:
        return total_cols  # full (lane-)axis block; allowed (== full array dim)
    fitting = [c for c in cands if rows * c * itemsize <= target_bytes]
    return max(fitting) if fitting else min(cands)


def position_encoding_forward(
    x: jnp.ndarray,
    p_table: jnp.ndarray,
    *,
    dropout_p: float = 0.0,
    training: bool = False,
    seed: int = 0,
) -> jnp.ndarray:
    """forward(X) = dropout(X + P[:S, :]) with X of shape (B, S, H)."""
    B, S, H = x.shape
    assert p_table.shape[1] == H and p_table.shape[0] >= S

    F = S * H
    x2 = x.reshape(B, F)                                  # lane-dense flat view
    p2 = p_table[:S].astype(x.dtype).reshape(1, F)        # cast once in wrapper

    tcol = _choose_col_tile(F, B, jnp.dtype(x.dtype).itemsize)
    grid = (F // tcol,)
    out_shape = jax.ShapeDtypeStruct((B, F), x.dtype)
    cparams = pltpu.CompilerParams(dimension_semantics=("parallel",))

    apply_dropout = bool(training) and float(dropout_p) > 0.0

    if apply_dropout:
        kernel = functools.partial(
            _pe_dropout_kernel,
            dropout_p=float(dropout_p),
            col_tile=tcol,
            total_cols=F,
        )
        grid_spec = pltpu.PrefetchScalarGridSpec(
            num_scalar_prefetch=1,
            grid=grid,
            in_specs=[
                pl.BlockSpec((B, tcol), lambda j, seed_ref: (0, j)),
                pl.BlockSpec((1, tcol), lambda j, seed_ref: (0, j)),
            ],
            out_specs=pl.BlockSpec((B, tcol), lambda j, seed_ref: (0, j)),
        )
        seed_arr = jnp.array([seed], dtype=jnp.int32)
        out2 = pl.pallas_call(
            kernel,
            out_shape=out_shape,
            grid_spec=grid_spec,
            compiler_params=cparams,
        )(seed_arr, x2, p2)
    else:
        # Eval path: no seed prefetch, no PRNG code emitted at all.
        out2 = pl.pallas_call(
            _pe_add_kernel,
            out_shape=out_shape,
            grid=grid,
            in_specs=[
                pl.BlockSpec((B, tcol), lambda j: (0, j)),
                pl.BlockSpec((1, tcol), lambda j: (0, j)),
            ],
            out_specs=pl.BlockSpec((B, tcol), lambda j: (0, j)),
            compiler_params=cparams,
        )(x2, p2)

    return out2.reshape(B, S, H)


if __name__ == "__main__":
    # Small shapes consistent with the module: batch=2, seq=8, num_hiddens=32.
    B, S, H = 2, 8, 32
    MAX_LEN = 1000
    DROPOUT_P = 0.1

    key = jax.random.PRNGKey(0)
    x = jax.random.normal(key, (B, S, H), dtype=jnp.float32)

    P = make_position_table(H, MAX_LEN)
    ref = x + P[None, :S, :]

    # Eval mode (dropout is identity) -> exact reference check.
    y_eval = position_encoding_forward(
        x, P, dropout_p=DROPOUT_P, training=False, seed=0
    )
    y_eval = jax.block_until_ready(y_eval)
    assert jnp.allclose(y_eval, ref, atol=1e-6, rtol=1e-6), "mismatch vs reference"

    # Training mode (dropout active, deterministic per seed) -> binary check:
    # every element must be either 0 or (x + P) / (1 - p).
    y_train = position_encoding_forward(
        x, P, dropout_p=DROPOUT_P, training=True, seed=1234
    )
    y_train = jax.block_until_ready(y_train)
    scaled = ref * jnp.float32(1.0 / (1.0 - DROPOUT_P))
    ok = jnp.logical_or(
        jnp.isclose(y_train, 0.0, atol=1e-6),
        jnp.isclose(y_train, scaled, atol=1e-5, rtol=1e-5),
    )
    assert bool(jnp.all(ok)), "dropout output not in {0, (x+P)/(1-p)}"

    print("KERNEL_OK")
</pallas_src>

<mosaic_0001>
module attributes {stable_mosaic.version = 11 : i64} {
  func.func @_pe_add_kernel(%arg0: i32, %arg1: memref<2x256xf32, #tpu.memory_space<vmem>>, %arg2: memref<1x256xf32, #tpu.memory_space<vmem>>, %arg3: memref<2x256xf32, #tpu.memory_space<vmem>>) attributes {dimension_semantics = [#tpu.dimension_semantics<parallel>], iteration_bounds = array<i64: 1>, scalar_prefetch = 0 : i64, scratch_operands = 0 : i64, tpu.core_type = #tpu.core_type<tc>, window_params = [{transform_indices = @transform_0, window_bounds = array<i64: 2, 256>}, {transform_indices = @transform_1, window_bounds = array<i64: 1, 256>}, {transform_indices = @transform_2, window_bounds = array<i64: 2, 256>}]} {
    %c0 = arith.constant 0 : index
    %c0_0 = arith.constant 0 : index
    %0 = vector.load %arg1[%c0, %c0_0] : memref<2x256xf32, #tpu.memory_space<vmem>>, vector<2x256xf32>
    %c0_1 = arith.constant 0 : index
    %c0_2 = arith.constant 0 : index
    %1 = vector.load %arg2[%c0_1, %c0_2] : memref<1x256xf32, #tpu.memory_space<vmem>>, vector<1x256xf32>
    %2 = vector.broadcast %1 : vector<1x256xf32> to vector<2x256xf32>
    %3 = arith.addf %0, %2 : vector<2x256xf32>
    %c0_3 = arith.constant 0 : index
    %c0_4 = arith.constant 0 : index
    %4 = vector.load %arg3[%c0_3, %c0_4] : memref<2x256xf32, #tpu.memory_space<vmem>>, vector<2x256xf32>
    tpu.vector_store %arg3[%c0_3, %c0_4], %3 {strides = array<i32>} : memref<2x256xf32, #tpu.memory_space<vmem>>, vector<2x256xf32>,
    return
  }
  func.func @transform_0(%arg0: i32) -> (i32, i32) {
    %c0_i32 = arith.constant 0 : i32
    %c0_i32_0 = arith.constant 0 : i32
    return %c0_i32, %arg0 : i32, i32
  }
  func.func @transform_1(%arg0: i32) -> (i32, i32) {
    %c0_i32 = arith.constant 0 : i32
    %c0_i32_0 = arith.constant 0 : i32
    return %c0_i32, %arg0 : i32, i32
  }
  func.func @transform_2(%arg0: i32) -> (i32, i32) {
    %c0_i32 = arith.constant 0 : i32
    %c0_i32_0 = arith.constant 0 : i32
    return %c0_i32, %arg0 : i32, i32
  }
}

</mosaic_0001>

<bundles_post_ra>
// kernel: tpu_custom_call.1
= control target key start
LH: loop header
LB: loop body
LE: loop exit
PB: predicated region body
PF: predicated region fallthrough
CT: control target
= control target key end

     0   :  { %7 = vsyncpa [#allocation3], 0  ;;  %s177_s0 = inlined_call_operand.hbm [shape: f32[2,256], index: 0, kind: input, shape index: {}]   ;;  %s178_s1 = inlined_call_operand.hbm [shape: f32[1,256], index: 1, kind: input, shape index: {}]   ;;  %s179_s2 = inlined_call_operand.hbm [shape: f32[2,256], index: 2, kind: output, shape index: {}]  }
   0x1   :  { %8 = vsyncpa [#allocation6], 0 }
   0x2   :  { %9 = vsyncpa [#allocation4], 0  ;;  %s15_s11 = sshll.u32 %s177_s0, 4  ;;  %s150_s12 = smov [#allocation2]   ;;  %s16_s11 = int_to_ptr.hbm [resolvable:$true] %s15_s11 }
   0x3   :  { %s17_s13 = sshll.u32 %s150_s12, 4  ;;  %s26_s16 = sshll.u32 %s178_s1, 4  ;;  %s18_s13 = int_to_ptr.vmem [resolvable:$true] %s17_s13  ;;  %s27_s16 = int_to_ptr.hbm [resolvable:$true] %s26_s16 }
   0x4   :  { %20 = dma.hbm_to_vmem [thread:$0]  %s16_s11, 64, %s18_s13, [#allocation3]  }
   0x5   :  { %s151_s17 = smov [#allocation5]  }
   0x6   :  { %s28_s18 = sshll.u32 %s151_s17, 4  ;;  %s29_s18 = int_to_ptr.vmem [resolvable:$true] %s28_s18 }
   0x7   :  { %31 = dma.hbm_to_vmem [thread:$0]  %s27_s16, 32, %s29_s18, [#allocation6]  }
   0x8   :  { %144 = dma.done.wait [#allocation3], 64  }
   0x9   :  { %145 = vsyncadd [#allocation3], 4294967232 }
   0xa   :  { %146 = dma.done.wait [#allocation6], 32  }
   0xb   :  { %147 = vsyncadd [#allocation6], 4294967264  ;;  %v41_v0 = vld [vmem:[#allocation5] sm:$0x3]  ;;  %vm46_vm0 = vcmask 1041408   ;;  %s152_s0 = smov [#allocation7]  }
   0xc   :  { %v43_v1 = vperm.slane %v41_v0, 0  ;;  %v44_v2 = vperm.slane %v41_v0, 1  ;;  %v40_v3 = vld [vmem:[#allocation2] sm:$0xf]  ;;  %s56_s19 = sshll.u32 %s152_s0, 4  ;;  %s58_s21 = sshll.u32 %s179_s2, 4  ;;  %s57_s19 = int_to_ptr.vmem [resolvable:$true] %s56_s19  ;;  %s59_s21 = int_to_ptr.hbm [resolvable:$true] %s58_s21 }
   0xe   :  { %v45_v4 = vrot.slane %v44_v2, 6 }
  0x10   :  { %v47_v5 = vsel %vm46_vm0, %v43_v1, %v45_v4 }
  0x11   :  { %v49_v6 = vadd.f32 %v47_v5, %v40_v3 }
  0x13   :  { %50 = vst [vmem:[#allocation7] sm:$0xf] %v49_v6 }
  0x14   :  { %61 = dma.vmem_to_hbm [thread:$0]  %s57_s19, 64, %s59_s21, [#allocation4]  }
  0x15   :  { %148 = dma.done.wait [#allocation4], 64  }
  0x16   :  { %149 = vsyncadd [#allocation4], 4294967232 }
  0x17   :  { %66 = vsyncpa [#allocation3], 1 }
  0x18   :  { %67 = vsyncpa [#allocation6], 1 }
  0x19   :  { %68 = vsyncpa [#allocation4], 1 }

</bundles_post_ra>
